<compile_context>
chip_gen: v5e
topology: v5e:2x2
jax: 0.10.0
libtpu: 0.0.40
codegen_flags: <defaults>
</compile_context>

<pallas_src>
import functools

import jax
import jax.numpy as jnp
from jax.experimental import pallas as pl
from jax.experimental.pallas import tpu as pltpu


# ----------------------------- hardware-aware tiling -----------------------------

def _device_kind():
    try:
        return jax.devices()[0].device_kind.lower()
    except Exception:
        return ""


def _vmem_budget_bytes():
    """~70% of physical VMEM (leaves compiler-internal scratch headroom; ~45 MiB on
    the 64 MiB v7x parts, ~90 MiB on 128 MiB v5e/v6e)."""
    try:
        cap = int(pltpu.get_tpu_info().vmem_capacity_bytes)
    except Exception:
        cap = (64 << 20) if "v7" in _device_kind() else (128 << 20)
    return int(min(int(cap * 0.70), 100 << 20))


def _pick_cout_tile(cout_padded):
    """Only lane-dense tiles: 128 on v5e (128-wide MXU), 256/128 on v6e/v7x."""
    cap = 128 if "v5" in _device_kind() else 256
    if cap >= 256 and cout_padded % 256 == 0:
        return 256
    return 128


def _pick_row_strip(h_out, w_in, w_out, cin, kkc, tco, k, budget, min_strips=1):
    """Largest divisor of h_out whose per-step working set (double-buffered operands
    + in-kernel im2col temporaries) fits the VMEM budget."""
    def need(s):
        b = 0
        b += 2 * s * w_in * cin * 2              # main input strip (bf16), x2 buffers
        b += 2 * (k - 1) * w_in * cin * 2        # halo rows, x2 buffers
        b += 2 * kkc * tco * 2                   # weight tile (bf16), x2 buffers
        b += 2 * tco * 4                         # bias, x2 buffers
        b += 2 * s * w_out * tco * 4             # f32 output strip, x2 buffers
        # in-kernel temporaries of the im2col build + matmul result
        b += (s + k - 1) * w_in * cin * 2        # assembled rows
        b += (s + k - 1) * w_out * k * cin * 2   # dx-folded copy
        b += s * w_out * kkc * 2                 # im2col patch matrix
        b += s * w_out * tco * 4                 # f32 matmul result before store
        return b

    head = 4 << 20
    divs = [d for d in range(1, h_out + 1) if h_out % d == 0]
    fit = [d for d in divs if need(d) + head <= budget]
    if not fit:
        return 1
    pick = max(fit)
    if min_strips > 1:                           # keep both v7x TensorCores busy
        cands = [d for d in fit if h_out // d >= min_strips]
        if cands:
            pick = max(cands)
    return pick


# ------------------------------ conv + ReLU kernel ------------------------------

def _make_conv_relu_kernel(k, p, s, h_in, h_axis):
    n_top = p
    n_bot = k - 1 - p

    def kernel(*refs):
        # refs: [x_main, top_halo_0..p-1, bot_halo_0..k-2-p, w2d, bias, out]
        x_ref = refs[0]
        top_refs = refs[1:1 + n_top]
        bot_refs = refs[1 + n_top:1 + n_top + n_bot]
        w_ref = refs[1 + n_top + n_bot]          # (K*K*Cin, Tco) bf16
        b_ref = refs[2 + n_top + n_bot]          # (1, Tco) f32
        o_ref = refs[3 + n_top + n_bot]          # (1, S, Wout, Tco) f32

        _, s_out, w_out, tco = o_ref.shape
        cin = x_ref.shape[-1]
        hi = pl.program_id(h_axis)

        # --- assemble the S + K - 1 input rows of this strip (H halo, zero-masked) ---
        rows = []
        for j, r in enumerate(top_refs):
            row = r[0]                                    # (1, W, Cin)
            valid = (hi * s - p + j) >= 0                 # top padding rows -> zero
            rows.append(jnp.where(valid, row, jnp.zeros_like(row)))
        rows.append(x_ref[0])                             # (S, W, Cin)
        for j, r in enumerate(bot_refs):
            row = r[0]
            valid = (hi * s + s + j) < h_in               # bottom padding rows -> zero
            rows.append(jnp.where(valid, row, jnp.zeros_like(row)))
        xs = rows[0] if len(rows) == 1 else jnp.concatenate(rows, axis=0)

        # --- zero-pad W in VMEM (replaces the wrapper-side HBM pad pass) ---
        if p:
            zcol = jnp.zeros((xs.shape[0], p, cin), xs.dtype)
            xs = jnp.concatenate([zcol, xs, zcol], axis=1)   # (S+K-1, W+2p, Cin)

        # --- im2col: fold the K*K taps into the contraction dimension ---
        # K width-shifted copies -> channel index dx*Cin + c
        xw = jnp.concatenate([xs[:, dx:dx + w_out, :] for dx in range(k)], axis=-1)
        # K height-shifted copies -> channel index dy*K*Cin + dx*Cin + c
        patch = jnp.concatenate([xw[dy:dy + s_out] for dy in range(k)], axis=-1)
        patch = patch.reshape(s_out * w_out, k * k * cin)

        # single MXU matmul (bf16 in, f32 accumulate), fused bias + ReLU epilogue,
        # one lane-dense store.
        acc = jnp.dot(patch, w_ref[...], preferred_element_type=jnp.float32)
        acc = acc + b_ref[...]
        o_ref[0] = jnp.maximum(acc, 0.0).reshape(s_out, w_out, tco).astype(o_ref.dtype)

    return kernel


# --------------------------------- NHWC wrapper ---------------------------------

def conv2d_relu_nhwc(x, w, b=None, *, padding=1, block_rows=None):
    """ReLU(conv2d(x, w, stride=1, padding=padding) + b).
    x: (N,H,W,Cin), w: (K,K,Cin,Cout) HWIO, b: (Cout,) or None. Returns f32 NHWC."""
    n, h, w_in, cin = x.shape
    k = w.shape[0]
    assert w.shape[1] == k and w.shape[2] == cin
    cout = w.shape[-1]
    p = int(padding)
    # TODO(synk): padding > (k-1)//2 would need extra halo rows beyond the main block.
    assert 0 <= 2 * p <= max(k - 1, 0), (p, k)
    h_out = h + 2 * p - k + 1
    w_out = w_in + 2 * p - k + 1
    assert h_out > 0 and w_out > 0

    # bf16 MXU operands (f32 accumulation in-kernel).
    xb = x.astype(jnp.bfloat16)

    # Lane-dense output: pad Cout to a multiple of 128 (zero weights / bias).
    cout_p = ((cout + 127) // 128) * 128
    kkc = k * k * cin
    wb = w.astype(jnp.bfloat16).reshape(kkc, cout)        # (dy, dx, cin) -> rows
    if cout_p != cout:
        wb = jnp.pad(wb, ((0, 0), (0, cout_p - cout)))
    bias = jnp.zeros((cout,), jnp.float32) if b is None else b.astype(jnp.float32)
    bb = jnp.pad(bias, (0, cout_p - cout)).reshape(1, cout_p)

    budget = _vmem_budget_bytes()
    tco = _pick_cout_tile(cout_p)
    n_ci = cout_p // tco
    # v7x has 2 TensorCores per chip: make sure there are >= 2 parallel grid steps.
    min_strips = 2 if ("v7" in _device_kind() and n * n_ci < 2) else 1
    s = int(block_rows) if block_rows is not None else _pick_row_strip(
        h_out, w_in, w_out, cin, kkc, tco, k, budget, min_strips)
    assert h_out % s == 0, (h_out, s)
    n_hi = h_out // s

    # Weight residency: if the weight tile outweighs an input strip, put the Cout-tile
    # axis outside the row-strip axis so the weight block index is constant along the
    # fast axis and is not re-DMA'd every strip.
    w_tile_bytes = kkc * tco * 2
    strip_bytes = (s + k - 1) * w_in * cin * 2
    ci_outer = (n_ci > 1) and (w_tile_bytes > strip_bytes)
    if ci_outer:
        grid = (n, n_ci, n_hi)
        hi_of = lambda g1, g2: g2
        ci_of = lambda g1, g2: g1
        h_axis = 2
    else:
        grid = (n, n_hi, n_ci)
        hi_of = lambda g1, g2: g1
        ci_of = lambda g1, g2: g2
        h_axis = 1

    # Halo rows come from the *unpadded* input with clamped row indices; the kernel
    # zero-masks the out-of-range (padding) rows for the first / last strip.
    def _top_map(ni, g1, g2, *, _j):
        return (ni, jnp.maximum(hi_of(g1, g2) * s - p + _j, 0), 0, 0)

    def _bot_map(ni, g1, g2, *, _j):
        return (ni, jnp.minimum(hi_of(g1, g2) * s + s + _j, h - 1), 0, 0)

    x_main_spec = pl.BlockSpec((1, s, w_in, cin),
                               lambda ni, g1, g2: (ni, hi_of(g1, g2), 0, 0))
    top_specs = [pl.BlockSpec((1, 1, w_in, cin), functools.partial(_top_map, _j=j))
                 for j in range(p)]
    bot_specs = [pl.BlockSpec((1, 1, w_in, cin), functools.partial(_bot_map, _j=j))
                 for j in range(k - 1 - p)]
    w_spec = pl.BlockSpec((kkc, tco), lambda ni, g1, g2: (0, ci_of(g1, g2)))
    b_spec = pl.BlockSpec((1, tco), lambda ni, g1, g2: (0, ci_of(g1, g2)))
    o_spec = pl.BlockSpec((1, s, w_out, tco),
                          lambda ni, g1, g2: (ni, hi_of(g1, g2), 0, ci_of(g1, g2)))

    flops = 2 * n * h_out * w_out * kkc * cout_p
    bytes_accessed = (xb.size * 2 + wb.size * 2 + bb.size * 4
                      + n * h_out * w_out * cout_p * 4)

    y = pl.pallas_call(
        _make_conv_relu_kernel(k, p, s, h, h_axis),
        out_shape=jax.ShapeDtypeStruct((n, h_out, w_out, cout_p), jnp.float32),
        grid_spec=pltpu.PrefetchScalarGridSpec(
            num_scalar_prefetch=0,
            grid=grid,
            in_specs=[x_main_spec, *top_specs, *bot_specs, w_spec, b_spec],
            out_specs=o_spec,
        ),
        compiler_params=pltpu.CompilerParams(
            dimension_semantics=("parallel", "parallel", "parallel"),
            vmem_limit_bytes=budget),
        cost_estimate=pl.CostEstimate(flops=flops, transcendentals=0,
                                      bytes_accessed=bytes_accessed),
    )(xb, *([xb] * (k - 1)), wb, bb)

    return y[..., :cout] if cout_p != cout else y


# ------------------------------- conv_block forward -------------------------------

@functools.partial(jax.jit, static_argnames=("padding", "block_rows"))
def conv_block_forward(x_nchw, weight_oihw, bias=None, *, padding=1, block_rows=None):
    """Equivalent of conv_block.forward: ReLU(Conv2d(x; stride=1, padding, bias)).
    x_nchw: (N,Cin,H,W) f32; weight_oihw: (Cout,Cin,K,K); bias: (Cout,) or None."""
    x = jnp.transpose(x_nchw, (0, 2, 3, 1))           # NCHW -> NHWC (edge glue only)
    w = jnp.transpose(weight_oihw, (2, 3, 1, 0))      # OIHW -> HWIO (edge glue only)
    y = conv2d_relu_nhwc(x, w, bias, padding=padding, block_rows=block_rows)
    return jnp.transpose(y, (0, 3, 1, 2))             # NHWC -> NCHW


if __name__ == "__main__":
    key = jax.random.PRNGKey(0)
    kx, kw = jax.random.split(key)

    # conv_block(ch_in=4, ch_out=32, kernel_size=3) with default padding=1, bias=False.
    ch_in, ch_out, ksize = 4, 32, 3
    x = jax.random.normal(kx, (2, ch_in, 16, 16), jnp.float32)
    w = jax.random.normal(kw, (ch_out, ch_in, ksize, ksize), jnp.float32)
    w = w * (1.0 / (ksize * ksize * ch_in)) ** 0.5

    # Reference with the same bf16 operand cast and f32 accumulation.
    ref = jax.lax.conv_general_dilated(
        x.astype(jnp.bfloat16),
        jnp.transpose(w, (2, 3, 1, 0)).astype(jnp.bfloat16),
        window_strides=(1, 1), padding=((1, 1), (1, 1)),
        dimension_numbers=("NCHW", "HWIO", "NCHW"),
        preferred_element_type=jnp.float32)
    ref = jnp.maximum(ref, 0.0)

    # Forced 2-strip tiling: exercises the clamped top / bottom halo paths separately.
    y = jax.block_until_ready(conv_block_forward(x, w, None, padding=1, block_rows=8))
    assert y.shape == (2, ch_out, 16, 16), y.shape
    assert y.dtype == jnp.float32
    assert jnp.allclose(y, ref, rtol=2e-2, atol=2e-2), float(jnp.max(jnp.abs(y - ref)))

    # Auto tiling (single strip for this small image): both halo rows zero-masked.
    y2 = jax.block_until_ready(conv_block_forward(x, w, None, padding=1))
    assert jnp.allclose(y2, ref, rtol=2e-2, atol=2e-2), float(jnp.max(jnp.abs(y2 - ref)))

    print("KERNEL_OK")
</pallas_src>

<mosaic_0001>
module attributes {stable_mosaic.version = 11 : i64} {
  func.func @kernel(%arg0: i32, %arg1: i32, %arg2: i32, %arg3: memref<1x8x16x4xbf16, #tpu.memory_space<vmem>>, %arg4: memref<1x1x16x4xbf16, #tpu.memory_space<vmem>>, %arg5: memref<1x1x16x4xbf16, #tpu.memory_space<vmem>>, %arg6: memref<36x128xbf16, #tpu.memory_space<vmem>>, %arg7: memref<1x128xf32, #tpu.memory_space<vmem>>, %arg8: memref<1x8x16x128xf32, #tpu.memory_space<vmem>>) attributes {dimension_semantics = [#tpu.dimension_semantics<parallel>, #tpu.dimension_semantics<parallel>, #tpu.dimension_semantics<parallel>], iteration_bounds = array<i64: 2, 2, 1>, scalar_prefetch = 0 : i64, scratch_operands = 0 : i64, tpu.core_type = #tpu.core_type<tc>, window_params = [{transform_indices = @transform_0, window_bounds = array<i64: 1, 8, 16, 4>}, {transform_indices = @transform_1, window_bounds = array<i64: 1, 1, 16, 4>}, {transform_indices = @transform_2, window_bounds = array<i64: 1, 1, 16, 4>}, {transform_indices = @transform_3, window_bounds = array<i64: 36, 128>}, {transform_indices = @transform_4, window_bounds = array<i64: 1, 128>}, {transform_indices = @transform_5, window_bounds = array<i64: 1, 8, 16, 128>}]} {
    %c0 = arith.constant 0 : index
    %c0_0 = arith.constant 0 : index
    %c0_1 = arith.constant 0 : index
    %c0_2 = arith.constant 0 : index
    %0 = vector.load %arg4[%c0, %c0_0, %c0_1, %c0_2] : memref<1x1x16x4xbf16, #tpu.memory_space<vmem>>, vector<1x1x16x4xbf16>
    %1 = vector.shape_cast %0 : vector<1x1x16x4xbf16> to vector<1x16x4xbf16>
    %c8_i32 = arith.constant 8 : i32
    %2 = arith.muli %arg1, %c8_i32 : i32
    %c1_i32 = arith.constant 1 : i32
    %3 = arith.subi %2, %c1_i32 : i32
    %c0_i32 = arith.constant 0 : i32
    %4 = arith.addi %3, %c0_i32 : i32
    %c0_i32_3 = arith.constant 0 : i32
    %5 = arith.cmpi sge, %4, %c0_i32_3 : i32
    %cst = arith.constant 0.000000e+00 : bf16
    %6 = vector.broadcast %cst : bf16 to vector<1x16x4xbf16>
    %7 = arith.select %5, %1, %6 : vector<1x16x4xbf16>
    %c0_4 = arith.constant 0 : index
    %c0_5 = arith.constant 0 : index
    %c0_6 = arith.constant 0 : index
    %c0_7 = arith.constant 0 : index
    %8 = vector.load %arg3[%c0_4, %c0_5, %c0_6, %c0_7] : memref<1x8x16x4xbf16, #tpu.memory_space<vmem>>, vector<1x8x16x4xbf16>
    %9 = vector.shape_cast %8 : vector<1x8x16x4xbf16> to vector<8x16x4xbf16>
    %c0_8 = arith.constant 0 : index
    %c0_9 = arith.constant 0 : index
    %c0_10 = arith.constant 0 : index
    %c0_11 = arith.constant 0 : index
    %10 = vector.load %arg5[%c0_8, %c0_9, %c0_10, %c0_11] : memref<1x1x16x4xbf16, #tpu.memory_space<vmem>>, vector<1x1x16x4xbf16>
    %11 = vector.shape_cast %10 : vector<1x1x16x4xbf16> to vector<1x16x4xbf16>
    %c8_i32_12 = arith.constant 8 : i32
    %12 = arith.muli %arg1, %c8_i32_12 : i32
    %c8_i32_13 = arith.constant 8 : i32
    %13 = arith.addi %12, %c8_i32_13 : i32
    %c0_i32_14 = arith.constant 0 : i32
    %14 = arith.addi %13, %c0_i32_14 : i32
    %c16_i32 = arith.constant 16 : i32
    %15 = arith.cmpi slt, %14, %c16_i32 : i32
    %cst_15 = arith.constant 0.000000e+00 : bf16
    %16 = vector.broadcast %cst_15 : bf16 to vector<1x16x4xbf16>
    %17 = arith.select %15, %11, %16 : vector<1x16x4xbf16>
    %18 = tpu.concatenate %7, %9, %17 in 0 : vector<1x16x4xbf16>, vector<8x16x4xbf16>, vector<1x16x4xbf16> -> vector<10x16x4xbf16>
    %cst_16 = arith.constant 0.000000e+00 : bf16
    %19 = vector.broadcast %cst_16 : bf16 to vector<10x1x4xbf16>
    %20 = tpu.concatenate %19, %18, %19 in 1 : vector<10x1x4xbf16>, vector<10x16x4xbf16>, vector<10x1x4xbf16> -> vector<10x18x4xbf16>
    %21 = vector.extract_strided_slice %20 {offsets = [0, 0, 0], sizes = [10, 16, 4], strides = [1, 1, 1]} : vector<10x18x4xbf16> to vector<10x16x4xbf16>
    %22 = vector.extract_strided_slice %20 {offsets = [0, 1, 0], sizes = [10, 16, 4], strides = [1, 1, 1]} : vector<10x18x4xbf16> to vector<10x16x4xbf16>
    %23 = vector.extract_strided_slice %20 {offsets = [0, 2, 0], sizes = [10, 16, 4], strides = [1, 1, 1]} : vector<10x18x4xbf16> to vector<10x16x4xbf16>
    %24 = tpu.concatenate %21, %22, %23 in 2 : vector<10x16x4xbf16>, vector<10x16x4xbf16>, vector<10x16x4xbf16> -> vector<10x16x12xbf16>
    %25 = vector.extract_strided_slice %24 {offsets = [0, 0, 0], sizes = [8, 16, 12], strides = [1, 1, 1]} : vector<10x16x12xbf16> to vector<8x16x12xbf16>
    %26 = vector.extract_strided_slice %24 {offsets = [1, 0, 0], sizes = [8, 16, 12], strides = [1, 1, 1]} : vector<10x16x12xbf16> to vector<8x16x12xbf16>
    %27 = vector.extract_strided_slice %24 {offsets = [2, 0, 0], sizes = [8, 16, 12], strides = [1, 1, 1]} : vector<10x16x12xbf16> to vector<8x16x12xbf16>
    %28 = tpu.concatenate %25, %26, %27 in 2 : vector<8x16x12xbf16>, vector<8x16x12xbf16>, vector<8x16x12xbf16> -> vector<8x16x36xbf16>
    %29 = vector.shape_cast %28 : vector<8x16x36xbf16> to vector<128x36xbf16>
    %c0_17 = arith.constant 0 : index
    %c0_18 = arith.constant 0 : index
    %30 = vector.load %arg6[%c0_17, %c0_18] : memref<36x128xbf16, #tpu.memory_space<vmem>>, vector<36x128xbf16>
    %cst_19 = arith.constant dense<0.000000e+00> : vector<128x128xf32>
    %31 = tpu.matmul %29, %30, %cst_19 {dimension_numbers = #tpu.dot_dimension_numbers<[1], [0], [0], [1], [0, 0, 1, 1], [], []>} : vector<128x36xbf16>, vector<36x128xbf16>, vector<128x128xf32> -> vector<128x128xf32>
    %c0_20 = arith.constant 0 : index
    %c0_21 = arith.constant 0 : index
    %32 = vector.load %arg7[%c0_20, %c0_21] : memref<1x128xf32, #tpu.memory_space<vmem>>, vector<1x128xf32>
    %33 = vector.broadcast %32 : vector<1x128xf32> to vector<128x128xf32>
    %34 = arith.addf %31, %33 : vector<128x128xf32>
    %cst_22 = arith.constant 0.000000e+00 : f32
    %35 = vector.broadcast %cst_22 : f32 to vector<128x128xf32>
    %36 = arith.maximumf %34, %35 : vector<128x128xf32>
    %37 = vector.shape_cast %36 : vector<128x128xf32> to vector<8x16x128xf32>
    %c0_23 = arith.constant 0 : index
    %c0_24 = arith.constant 0 : index
    %c0_25 = arith.constant 0 : index
    %c0_26 = arith.constant 0 : index
    %38 = vector.load %arg8[%c0_23, %c0_24, %c0_25, %c0_26] : memref<1x8x16x128xf32, #tpu.memory_space<vmem>>, vector<1x8x16x128xf32>
    %39 = vector.shape_cast %38 : vector<1x8x16x128xf32> to vector<8x16x128xf32>
    %40 = vector.shape_cast %37 : vector<8x16x128xf32> to vector<1x8x16x128xf32>
    tpu.vector_store %arg8[%c0_23, %c0_24, %c0_25, %c0_26], %40 {strides = array<i32>} : memref<1x8x16x128xf32, #tpu.memory_space<vmem>>, vector<1x8x16x128xf32>,
    return
  }
  func.func @transform_0(%arg0: i32, %arg1: i32, %arg2: i32) -> (i32, i32, i32, i32) {
    %c0_i32 = arith.constant 0 : i32
    %c0_i32_0 = arith.constant 0 : i32
    %c0_i32_1 = arith.constant 0 : i32
    return %arg0, %arg1, %c0_i32, %c0_i32_0 : i32, i32, i32, i32
  }
  func.func @transform_1(%arg0: i32, %arg1: i32, %arg2: i32) -> (i32, i32, i32, i32) {
    %c8_i32 = arith.constant 8 : i32
    %0 = arith.muli %arg1, %c8_i32 : i32
    %c1_i32 = arith.constant 1 : i32
    %1 = arith.subi %0, %c1_i32 : i32
    %c0_i32 = arith.constant 0 : i32
    %2 = arith.addi %1, %c0_i32 : i32
    %c0_i32_0 = arith.constant 0 : i32
    %3 = arith.maxsi %2, %c0_i32_0 : i32
    %c0_i32_1 = arith.constant 0 : i32
    %c0_i32_2 = arith.constant 0 : i32
    %c0_i32_3 = arith.constant 0 : i32
    return %arg0, %3, %c0_i32_1, %c0_i32_2 : i32, i32, i32, i32
  }
  func.func @transform_2(%arg0: i32, %arg1: i32, %arg2: i32) -> (i32, i32, i32, i32) {
    %c8_i32 = arith.constant 8 : i32
    %0 = arith.muli %arg1, %c8_i32 : i32
    %c8_i32_0 = arith.constant 8 : i32
    %1 = arith.addi %0, %c8_i32_0 : i32
    %c0_i32 = arith.constant 0 : i32
    %2 = arith.addi %1, %c0_i32 : i32
    %c15_i32 = arith.constant 15 : i32
    %3 = arith.minsi %2, %c15_i32 : i32
    %c0_i32_1 = arith.constant 0 : i32
    %c0_i32_2 = arith.constant 0 : i32
    %c0_i32_3 = arith.constant 0 : i32
    return %arg0, %3, %c0_i32_1, %c0_i32_2 : i32, i32, i32, i32
  }
  func.func @transform_3(%arg0: i32, %arg1: i32, %arg2: i32) -> (i32, i32) {
    %c0_i32 = arith.constant 0 : i32
    %c0_i32_0 = arith.constant 0 : i32
    return %c0_i32, %arg2 : i32, i32
  }
  func.func @transform_4(%arg0: i32, %arg1: i32, %arg2: i32) -> (i32, i32) {
    %c0_i32 = arith.constant 0 : i32
    %c0_i32_0 = arith.constant 0 : i32
    return %c0_i32, %arg2 : i32, i32
  }
  func.func @transform_5(%arg0: i32, %arg1: i32, %arg2: i32) -> (i32, i32, i32, i32) {
    %c0_i32 = arith.constant 0 : i32
    %c0_i32_0 = arith.constant 0 : i32
    return %arg0, %arg1, %c0_i32, %arg2 : i32, i32, i32, i32
  }
}

</mosaic_0001>

<bundles_post_ra>
// kernel: conv_block_forward.1
= control target key start
LH: loop header
LB: loop body
LE: loop exit
PB: predicated region body
PF: predicated region fallthrough
CT: control target
= control target key end

     0   :  { %s1504_s18 = smov 0   ;;  %s1506_s19 = smov 0   ;;  %s1889_s0 = inlined_call_operand.vmem [shape: bf16[2,16,16,4], index: 0, kind: input, shape index: {}, may-alias: {0,1,2}]   ;;  %s1890_s1 = inlined_call_operand.vmem [shape: bf16[2,16,16,4], index: 1, kind: input, shape index: {}, may-alias: {0,1,2}]   ;;  %s1891_s2 = inlined_call_operand.vmem [shape: bf16[2,16,16,4], index: 2, kind: input, shape index: {}, may-alias: {0,1,2}]   ;;  %s1892_s3 = inlined_call_operand.vmem [shape: bf16[36,128], index: 3, kind: input, shape index: {}]   ;;  %s1893_s4 = inlined_call_operand.vmem [shape: f32[1,128], index: 4, kind: input, shape index: {}]   ;;  %s1894_s5 = inlined_call_operand.vmem [shape: f32[2,16,16,128], index: 5, kind: output, shape index: {}]  }
   0x1   :  { %s1508_s20 = smov 0   ;;  %s1510_s21 = smov 0  }
   0x2   :  { %s1512_s22 = smov 0  }
   0x3 LB: > { %s30_s23 = sadd.s32 1, %s1460_s20  ;;  %s34_s24 = sadd.s32 1, %s1464_s21  ;;  %s1468_s22 = sphi %s1512_s22, %s15_s22   ;;  %s1464_s21 = sphi %s1510_s21, %s1900_s21   ;;  %s1460_s20 = sphi %s1508_s20, %s1899_s20   ;;  %s1456_s19 = sphi %s1506_s19, %s1898_s19   ;;  %s1452_s18 = sphi %s1504_s18, %s1897_s18  }
   0x4   : > { %p32_p0 = scmp.ge.s32.totalorder %s30_s23, 2  ;;  %p1286_p1 = scmp.ge.s32.totalorder %s1468_s22, 1 }
   0x5   : > { %p299_p2 = scmp.lt.s32.totalorder %s1468_s22, 5 }
   0x6   : > { %s1902_s23 = smov (%p32_p0, %s30_s23), 0  ;;  %s1904_s24 = smov (!%p32_p0, %s34_s24), %s1464_s21 }
   0x7   : > { %p300_p3 = pnand %p1286_p1, %p299_p2  ;;  %p36_p4 = scmp.ge.s32.totalorder %s1904_s24, 2 }
   0x8   : > { %s1287_s25 = sshll.u32 (!%p300_p3), %s1452_s18, 3  ;;  %p374_p5 = scmp.lt.s32.totalorder (!%p300_p3), %s1456_s19, 1 }
   0x9   : > { %s1906_s24 = smov (%p36_p4, %s1904_s24), 0  ;;  %303 = sbr.rel (%p300_p3) target bundleno = 460 (0x1cc), region = 40 }
   0xa   : > { %p376_p6 = scmp.lt.s32.totalorder (!%p300_p3), %s1287_s25, 15  ;;  %s1536_s29 = sadd.s32 (!%p300_p3), 8, %s1287_s25 }
   0xb   : > { %p403_p7 = scmp.lt.s32.totalorder (!%p300_p3), %s1536_s29, 15  ;;  %s1555_s10 = sadd.s32 (!%p300_p3), 4294967295, %s1287_s25 }
   0xc   : > { %p386_p8 = scmp.gt.s32.totalorder (!%p300_p3), %s1555_s10, 0  ;;  %p1293_p9 = scmp.lt.s32.totalorder (!%p300_p3), %s1555_s10, 15 }
   0xd   : > { %s1470_s14 = smov (!%p300_p3), 8   ;;  %p469_p10 = scmp.lt.s32.totalorder (!%p300_p3), %s1536_s29, 16 }
   0xe   : > { %s1908_s19 = smov (!%p374_p5, %s1456_s19), 1  ;;  %vm615_vm0 = vcmask 1040384   ;;  %vm616_vm1 = vsmask.f32 256  ;;  %vm799_vm3 = vcmask 1046528   ;;  %p444_p11 = scmp.ge.s32.totalorder %s1555_s10, 0 }
   0xf   : > { %s377_s26 = scalar_select %p376_p6, %s1287_s25, 15  ;;  %vm1557_vm2 = vmand %vm615_vm0, %vm616_vm1  ;;  %vm638_vm4 = vsmask.f32 7424  ;;  %vm850_vm7 = vcmask 31744   ;;  %vm871_vm8 = vcmask 64512   ;;  %vm1008_vm9 = vcmask 1041408  }
  0x10   : > { %s1534_s27 = sshll.u32 %s1908_s19, 5  ;;  %s1471_s19 = smov 4   ;;  %vm933_vm10 = vcmask 97280   ;;  %vm950_vm11 = vcmask 195584   ;;  %vm991_vm12 = vcmask 293888  }
  0x11   : > { %s1288_s28 = sshll.u32 %s377_s26, 1 }
  0x12   : > { %s1539_s30 = sadd.s32 %s1534_s27, %s1288_s28 }
  0x13   : > { %s1290_s6 = sshll.u32 %s1539_s30, 2  ;;  %s1311_s25 = sshll.u32 %s1539_s30, 3 }
  0x14   : > { %s1545_s9 = scalar_lea.vmem %s1889_s0, %s1290_s6 }
  0x15   : > { %v1373_v0 = vld [vmem:[%s1545_s9 + $0x38] sm:$0xff]  ;;  %v1371_v1 = vld [vmem:[%s1545_s9 + $0x28] sm:$0xff]  ;;  %v1370_v2 = vld [vmem:[%s1545_s9 + $0x20] sm:$0xff]  ;;  %s404_s11 = scalar_select %p403_p7, %s1536_s29, 15 }
  0x16   : > { %v1372_v3 = vld [vmem:[%s1545_s9 + $0x30] sm:$0xff]  ;;  %v582_v5 = vshrl.u32 %v1373_v0, 16  ;;  %v585_v6 = vshll.u32 %v1373_v0, 16  ;;  %v568_v7 = vshrl.u32 %v1371_v1, 16  ;;  %v571_v8 = vshll.u32 %v1371_v1, 16  ;;  %v1565_v16 = vld [vmem:[%s1545_s9 + $0x8] sm:$0xff] }
  0x17   : > { %v1553_v4 = vld [vmem:[%s1545_s9 + $0x10] sm:$0xff]  ;;  %v561_v10 = vshrl.u32 %v1370_v2, 16  ;;  %v564_v11 = vshll.u32 %v1370_v2, 16  ;;  %v575_v12 = vshrl.u32 %v1372_v3, 16  ;;  %v578_v15 = vshll.u32 %v1372_v3, 16  ;;  %s1910_s11 = smov (!%p403_p7, %s404_s11), 15 }
  0x18   : > { %v584_v13 = vrot.slane %v582_v5, 7  ;;  %v570_v14 = vrot.slane %v568_v7, 7  ;;  %v547_v19 = vshrl.u32 %v1553_v4, 16  ;;  %v550_v20 = vshll.u32 %v1553_v4, 16  ;;  %s387_s12 = scalar_select %p386_p8, %s1555_s10, 0 }
  0x19   : > { %v563_v17 = vrot.slane %v561_v10, 7  ;;  %v577_v18 = vrot.slane %v575_v12, 7  ;;  %v540_v32 = vshrl.u32 %v1565_v16, 16  ;;  %s1305_s13 = sshll.u32 %s1910_s11, 1  ;;  %v543_v60 = vshll.u32 %v1565_v16, 16  ;;  %s1472_s10 = smov 12  }
  0x1a   : > { %v587_v21 = vor.u32 %v585_v6, %v584_v13  ;;  %v636_v22 = vsel %vm1557_vm2, %v584_v13, 0  ;;  %v573_v23 = vor.u32 %v571_v8, %v570_v14  ;;  %v634_v24 = vsel %vm1557_vm2, %v570_v14, 0  ;;  %s1912_s12 = smov (!%p1293_p9, %s387_s12), 15  ;;  %s1616_s15 = sadd.s32 %s1305_s13, %s1534_s27  ;;  %v1366_v13 = vld [vmem:[%s1545_s9] sm:$0xff] }
  0x1b   : > { %v825_v25 = vrot.slane %v636_v22, 1  ;;  %v819_v26 = vrot.slane %v634_v24, 1  ;;  %v719_v27 = vshll.u32 %v634_v24, 16  ;;  %v566_v28 = vor.u32 %v564_v11, %v563_v17  ;;  %s1298_s16 = sshll.u32 %s1912_s12, 1  ;;  %s1307_s18 = sshll.u32 %s1616_s15, 2 }
  0x1c   : > { %v1580_v29 = vsel %vm1557_vm2, 0, %v587_v21  ;;  %v1584_v30 = vsel %vm1557_vm2, 0, %v573_v23  ;;  %v633_v31 = vsel %vm1557_vm2, %v563_v17, 0  ;;  %v743_v40 = vshll.u32 %v636_v22, 16  ;;  %s1624_s17 = sadd.s32 %s1298_s16, %s1534_s27  ;;  %v1369_v17 = vld [vmem:[%s1545_s9 + $0x18] sm:$0xff]  ;;  %s413_s27 = scalar_lea.vmem %s1891_s2, %s1307_s18 }
  0x1d   : > { %v824_v33 = vrot.slane %v1580_v29, 1  ;;  %v818_v34 = vrot.slane %v1584_v30, 1  ;;  %v712_v35 = vshrl.u32 %v1584_v30, 16  ;;  %v714_v36 = vshll.u32 %v1584_v30, 16  ;;  %s470_s28 = scalar_select %p469_p10, 1, 0 }
  0x1e   : > { %v721_v37 = vrot.slane %v719_v27, 1  ;;  %v1596_v38 = vsel %vm1557_vm2, 0, %v566_v28  ;;  %v707_v39 = vshll.u32 %v633_v31, 16  ;;  %v736_v44 = vshrl.u32 %v1580_v29, 16  ;;  %v466_v28 = vld [vmem:[%s413_s27] sm:$0xf] }
  0x1f   : > { %v826_v41 = vsel %vm799_vm3, %v824_v33, %v825_v25  ;;  %v820_v42 = vsel %vm799_vm3, %v818_v34, %v819_v26  ;;  %v716_v43 = vrot.slane %v714_v36, 1  ;;  %v700_v45 = vshrl.u32 %v1596_v38, 16  ;;  %s1300_s29 = sshll.u32 %s1624_s17, 2  ;;  %s1473_s11 = smov 24  }
  0x20   : > { %846 = vrot.lane.b32.xlu1 %v826_v41, %s1470_s14  ;;  %842 = vrot.lane.b32.xlu0 %v820_v42, %s1470_s14  ;;  %v702_v46 = vshll.u32 %v1596_v38, 16  ;;  %v709_v47 = vrot.slane %v707_v39, 1  ;;  %v738_v48 = vshll.u32 %v1580_v29, 16  ;;  %v580_v50 = vor.u32 %v578_v15, %v577_v18  ;;  %s445_s6 = scalar_select %p444_p11, 1, 0 }
  0x21   : > { %v717_v49 = vor.u32 %v716_v43, %v712_v35  ;;  %v635_v51 = vsel %vm1557_vm2, %v577_v18, 0  ;;  %v815_v52 = vrot.slane %v1596_v38, 1  ;;  %v816_v56 = vrot.slane %v633_v31, 1  ;;  %v467_v35 = vld [vmem:[%s413_s27 + $0x4] sm:$0xf]  ;;  %s396_s9 = scalar_lea.vmem %s1890_s1, %s1300_s29 }
  0x22   : > { %v704_v53 = vrot.slane %v702_v46, 1  ;;  %v740_v54 = vrot.slane %v738_v48, 1  ;;  %v731_v55 = vshll.u32 %v635_v51, 16  ;;  %v1620_v57 = vsel %vm1557_vm2, 0, %v580_v50 }
  0x23   : > { %v549_v58 = vrot.slane %v547_v19, 7  ;;  %v542_v59 = vrot.slane %v540_v32, 7  ;;  %v724_v62 = vshrl.u32 %v1620_v57, 16  ;;  %v726_v63 = vshll.u32 %v1620_v57, 16 }
  0x24   : > { %v705_v61 = vor.u32 %v704_v53, %v700_v45  ;;  %v722_v0 = vsel %vm638_vm4, %v717_v49, %v721_v37  ;;  %v745_v1 = vrot.slane %v743_v40, 1  ;;  %v817_v2 = vsel %vm799_vm3, %v815_v52, %v816_v56 }
  0x25   : > { %v552_v3 = vor.u32 %v550_v20, %v549_v58  ;;  %v741_v5 = vor.u32 %v740_v54, %v736_v44  ;;  %v728_v6 = vrot.slane %v726_v63, 1  ;;  %v733_v7 = vrot.slane %v731_v55, 1  ;;  %840 = vrot.lane.b32.xlu2 %v817_v2, %s1470_s14 }
  0x26   : > { %v710_v4 = vsel %vm638_vm4, %v705_v61, %v709_v47  ;;  %v1640_v10 = vsel %vm1557_vm2, %v549_v58, 0  ;;  %v545_v11 = vor.u32 %v543_v60, %v542_v59  ;;  %v821_v12 = vrot.slane %v1620_v57, 1 }
  0x27   : > { %v1636_v8 = vsel %vm1557_vm2, 0, %v552_v3  ;;  %v729_v14 = vor.u32 %v728_v6, %v724_v62  ;;  %v1649_v16 = vsel %vm1557_vm2, %v542_v59, 0  ;;  %v822_v19 = vrot.slane %v635_v51, 1 }
  0x28   : > { %771 = vrot.lane.b32.xlu1 %v722_v0, %s1471_s19  ;;  %769 = vrot.lane.b32.xlu0 %v710_v4, %s1471_s19  ;;  %v678_v15 = vshll.u32 %v1636_v8, 16  ;;  %v1657_v18 = vsel %vm1557_vm2, 0, %v545_v11  ;;  %v746_v20 = vsel %vm638_vm4, %v741_v5, %v745_v1  ;;  %v676_v21 = vshrl.u32 %v1636_v8, 16 }
  0x29   : > { %v683_v22 = vshll.u32 %v1640_v10, 16  ;;  %v666_v23 = vshll.u32 %v1657_v18, 16  ;;  %v734_v24 = vsel %vm638_vm4, %v729_v14, %v733_v7  ;;  %v671_v25 = vshll.u32 %v1649_v16, 16 }
  0x2a   : > { %v823_v26 = vsel %vm799_vm3, %v821_v12, %v822_v19  ;;  %v533_v27 = vshrl.u32 %v1366_v13, 16  ;;  %v680_v31 = vrot.slane %v678_v15, 1  ;;  %v664_v32 = vshrl.u32 %v1657_v18, 16 }
  0x2b   : > { %v536_v33 = vshll.u32 %v1366_v13, 16  ;;  %v554_v34 = vshrl.u32 %v1369_v17, 16  ;;  %v668_v36 = vrot.slane %v666_v23, 1  ;;  %v557_v39 = vshll.u32 %v1369_v17, 16 }
  0x2c   : > { %v535_v37 = vrot.slane %v533_v27, 7  ;;  %v471_v40 = vstv %s470_s28  ;;  %v685_v41 = vrot.slane %v683_v22, 1  ;;  %v681_v47 = vor.u32 %v680_v31, %v676_v21  ;;  %s1856_s28 = scalar_lea.vmem %s1894_s5, %s1311_s25 }
  0x2d   : > { %844 = vrot.lane.b32.xlu2 %v823_v26, %s1470_s14  ;;  %v556_v42 = vrot.slane %v554_v34, 7  ;;  %vm472_vm5 = vcmp.eq.s32.totalorder %v471_v40, 1  ;;  %v673_v48 = vrot.slane %v671_v25, 1  ;;  %v669_v51 = vor.u32 %v668_v36, %v664_v32 }
  0x2e   : > { %v538_v43 = vor.u32 %v536_v33, %v535_v37  ;;  %v629_v44 = vsel %vm1557_vm2, %v535_v37, 0  ;;  %v473_v45 = vsel %vm472_vm5, %v466_v28, 0  ;;  %v474_v46 = vsel %vm472_vm5, %v467_v35, 0 }
  0x2f   : > { %v659_v49 = vshll.u32 %v629_v44, 16  ;;  %v559_v50 = vor.u32 %v557_v39, %v556_v42  ;;  %v513_v53 = vunpack.c.l.b16 %v473_v45  ;;  %v514_v54 = vunpack.c.l.b16 %v474_v46  ;;  %v440_v45 = vld [vmem:[%s396_s9] sm:$0xf]  ;;  %v441_v46 = vld [vmem:[%s396_s9 + $0x4] sm:$0xf] }
  0x30   : > { %775 = vrot.lane.b32.xlu1 %v746_v20, %s1471_s19  ;;  %773 = vrot.lane.b32.xlu0 %v734_v24, %s1471_s19  ;;  %v1676_v52 = vsel %vm1557_vm2, 0, %v538_v43  ;;  %v632_v59 = vsel %vm1557_vm2, %v556_v42, 0  ;;  %v686_v61 = vsel %vm638_vm4, %v681_v47, %v685_v41  ;;  %v674_v0 = vsel %vm638_vm4, %v669_v51, %v673_v48 }
  0x31   : > { %v652_v55 = vshrl.u32 %v1676_v52, 16  ;;  %v654_v56 = vshll.u32 %v1676_v52, 16  ;;  %v1682_v58 = vsel %vm1557_vm2, 0, %v559_v50  ;;  %v524_v60 = vpack.c.b16 %v514_v54, %v513_v53 }
  0x32   : > { %v661_v63 = vrot.slane %v659_v49, 1  ;;  %v690_v1 = vshll.u32 %v1682_v58, 16  ;;  %v688_v5 = vshrl.u32 %v1682_v58, 16  ;;  %v695_v6 = vshll.u32 %v632_v59, 16 }
  0x33   : > { %v656_v62 = vrot.slane %v654_v56, 1  ;;  %v589_v2 = vshrl.u32 %v524_v60, 16  ;;  %v592_v3 = vshll.u32 %v524_v60, 16  ;;  %v809_v12 = vrot.slane %v1636_v8, 1 }
  0x34   : > { %v692_v7 = vrot.slane %v690_v1, 1  ;;  %v810_v14 = vrot.slane %v1640_v10, 1  ;;  %v803_v15 = vrot.slane %v1676_v52, 1  ;;  %v804_v17 = vrot.slane %v629_v44, 1 }
  0x35   : > { %v657_v4 = vor.u32 %v656_v62, %v652_v55  ;;  %v591_v11 = vrot.slane %v589_v2, 7  ;;  %v697_v21 = vrot.slane %v695_v6, 1  ;;  %v812_v32 = vrot.slane %v1682_v58, 1 }
  0x36   : > { %v693_v20 = vor.u32 %v692_v7, %v688_v5  ;;  %v811_v25 = vsel %vm799_vm3, %v809_v12, %v810_v14  ;;  %v805_v10 = vsel %vm799_vm3, %v803_v15, %v804_v17  ;;  %v813_v33 = vrot.slane %v632_v59, 1 }
  0x37   : > { %v662_v13 = vsel %vm638_vm4, %v657_v4, %v661_v63  ;;  %v594_v19 = vor.u32 %v592_v3, %v591_v11  ;;  %v637_v22 = vsel %vm1557_vm2, %v591_v11, 0  ;;  %v806_v36 = vrot.slane %v1657_v18, 1 }
  0x38   : > { %765 = vrot.lane.b32.xlu0 %v686_v61, %s1471_s19  ;;  %763 = vrot.lane.b32.xlu1 %v674_v0, %s1471_s19  ;;  %v755_v27 = vshll.u32 %v637_v22, 16  ;;  %v698_v28 = vsel %vm638_vm4, %v693_v20, %v697_v21  ;;  %v807_v37 = vrot.slane %v1649_v16, 1  ;;  %v814_v39 = vsel %vm799_vm3, %v812_v32, %v813_v33 }
  0x39   : > { %761 = vrot.lane.b32.xlu2 %v662_v13, %s1471_s19  ;;  %v1701_v23 = vsel %vm1557_vm2, 0, %v594_v19  ;;  %v828_v43 = vrot.slane %v637_v22, 1  ;;  %v446_v16 = vstv %s445_s6 }
  0x3a   : > { %v750_v24 = vshll.u32 %v1701_v23, 16  ;;  %v748_v26 = vshrl.u32 %v1701_v23, 16  ;;  %v757_v35 = vrot.slane %v755_v27, 1  ;;  %v808_v41 = vsel %vm799_vm3, %v806_v36, %v807_v37 }
  0x3b   : > { %v827_v42 = vrot.slane %v1701_v23, 1  ;;  %vm447_vm6 = vcmp.eq.s32.totalorder %v446_v16, 1  ;;  %v1375_v16 = vld [vmem:[%s1892_s3 + $0x8] sm:$0xff] }
  0x3c   : > { %v752_v31 = vrot.slane %v750_v24, 1  ;;  %v448_v47 = vsel %vm447_vm6, %v440_v45, 0  ;;  %v449_v48 = vsel %vm447_vm6, %v441_v46, 0  ;;  %v1374_v45 = vld [vmem:[%s1892_s3] sm:$0xff] }
  0x3d   : > { %v829_v44 = vsel %vm799_vm3, %v827_v42, %v828_v43  ;;  %v495_v49 = vunpack.c.l.b16 %v448_v47  ;;  %v496_v50 = vunpack.c.l.b16 %v449_v48 }
  0x3e   : > { %v753_v34 = vor.u32 %v752_v31, %v748_v26 }
  0x3f   : > { %v515_v51 = vpack.c.b16 %v496_v50, %v495_v49 }
  0x40   : > { %836 = vrot.lane.b32.xlu1 %v811_v25, %s1470_s14  ;;  %832 = vrot.lane.b32.xlu0 %v805_v10, %s1470_s14  ;;  %v758_v40 = vsel %vm638_vm4, %v753_v34, %v757_v35 }
  0x41   : > { %767 = vrot.lane.b32.xlu2 %v698_v28, %s1471_s19  ;;  %v526_v53 = vshrl.u32 %v515_v51, 16  ;;  %v529_v55 = vshll.u32 %v515_v51, 16 }
  0x43   : > { %v528_v54 = vrot.slane %v526_v53, 7 }
  0x45   : > { %v531_v56 = vor.u32 %v529_v55, %v528_v54  ;;  %v628_v60 = vsel %vm1557_vm2, %v528_v54, 0 }
  0x46   : > { %v801_v62 = vrot.slane %v628_v60, 1  ;;  %v647_v3 = vshll.u32 %v628_v60, 16 }
  0x47   : > { %v1730_v59 = vsel %vm1557_vm2, 0, %v531_v56 }
  0x48   : > { %838 = vrot.lane.b32.xlu0 %v814_v39, %s1470_s14  ;;  %777 = vrot.lane.b32.xlu1 %v758_v40, %s1471_s19  ;;  %v800_v61 = vrot.slane %v1730_v59, 1  ;;  %v642_v0 = vshll.u32 %v1730_v59, 16  ;;  %v640_v1 = vshrl.u32 %v1730_v59, 16  ;;  %v649_v5 = vrot.slane %v647_v3, 1 }
  0x49   : > { %834 = vrot.lane.b32.xlu2 %v808_v41, %s1470_s14 }
  0x4a   : > { %v802_v63 = vsel %vm799_vm3, %v800_v61, %v801_v62  ;;  %v644_v2 = vrot.slane %v642_v0, 1 }
  0x4c   : > { %v645_v4 = vor.u32 %v644_v2, %v640_v1 }
  0x4e   : > { %v650_v6 = vsel %vm638_vm4, %v645_v4, %v649_v5 }
  0x50   : > { %759 = vrot.lane.b32.xlu1 %v650_v6, %s1471_s19 }
  0x51   : > { %848 = vrot.lane.b32.xlu2 %v829_v44, %s1470_s14 }
  0x59   : > { %830 = vrot.lane.b32.xlu2 %v802_v63, %s1470_s14 }
  0x7f   : > { %v841_v9 = vpop.permute.xlu2 %840 }
  0x87   : > { %v845_v7 = vpop.permute.xlu2 %844 }
  0x92   : > { %v847_v11 = vpop.permute.xlu1 %846  ;;  %v843_v12 = vpop.permute.xlu0 %842 }
  0x93   : > { %v762_v13 = vpop.permute.xlu2 %761 }
  0x9a   : > { %v772_v14 = vpop.permute.xlu1 %771  ;;  %v770_v15 = vpop.permute.xlu0 %769 }
  0x9b   : > { %v864_v17 = vsel %vm850_vm7, %v1584_v30, %v772_v14  ;;  %v862_v19 = vsel %vm850_vm7, %v1596_v38, %v770_v15  ;;  %v768_v22 = vpop.permute.xlu2 %767 }
  0x9c   : > { %v1746_v20 = vsel %vm871_vm8, %v862_v19, %v841_v9  ;;  %v1749_v21 = vsel %vm871_vm8, %v864_v17, %v843_v12 }
  0x9d   : > { %908 = vrot.lane.b32.xlu0 %v1746_v20, %s1472_s10  ;;  %925 = vrot.lane.b32.xlu2 %v1749_v21, %s1473_s11 }
  0xa2   : > { %v776_v24 = vpop.permute.xlu1 %775  ;;  %v774_v30 = vpop.permute.xlu0 %773 }
  0xa3   : > { %v868_v38 = vsel %vm850_vm7, %v1580_v29, %v776_v24  ;;  %v866_v25 = vsel %vm850_vm7, %v1620_v57, %v774_v30  ;;  %v835_v27 = vpop.permute.xlu2 %834  ;;  %v854_v57 = vsel %vm850_vm7, %v1676_v52, %v762_v13 }
  0xa4   : > { %v1760_v10 = vsel %vm871_vm8, %v866_v25, %v845_v7  ;;  %v889_v26 = vsel %vm871_vm8, %v868_v38, %v847_v11  ;;  %v1429_v38 = vld [vmem:[%s1893_s4] ss:$0 sm:$0xff] }
  0xa5   : > { %912 = vrot.lane.b32.xlu1 %v1760_v10, %s1472_s10  ;;  %929 = vrot.lane.b32.xlu0 %v889_v26, %s1473_s11 }
  0xaa   : > { %v766_v28 = vpop.permute.xlu0 %765  ;;  %v764_v31 = vpop.permute.xlu1 %763 }
  0xab   : > { %v856_v32 = vsel %vm850_vm7, %v1657_v18, %v764_v31  ;;  %v858_v33 = vsel %vm850_vm7, %v1636_v8, %v766_v28  ;;  %v860_v18 = vsel %vm850_vm7, %v1682_v58, %v768_v22  ;;  %v849_v41 = vpop.permute.xlu2 %848  ;;  %v971_v58 = vld [vmem:[%s1892_s3 + $0x10] sm:$0x3] }
  0xac   : > { %v1769_v29 = vsel %vm871_vm8, %v856_v32, %v835_v27 }
  0xad   : > { %917 = vrot.lane.b32.xlu2 %v1769_v29, %s1473_s11 }
  0xb2   : > { %v837_v34 = vpop.permute.xlu1 %836  ;;  %v833_v35 = vpop.permute.xlu0 %832 }
  0xb3   : > { %v1778_v36 = vsel %vm871_vm8, %v858_v33, %v837_v34  ;;  %v1781_v37 = vsel %vm871_vm8, %v854_v57, %v833_v35  ;;  %v831_v46 = vpop.permute.xlu2 %830 }
  0xb4   : > { %904 = vrot.lane.b32.xlu1 %v1778_v36, %s1472_s10  ;;  %900 = vrot.lane.b32.xlu0 %v1781_v37, %s1472_s10 }
  0xb5   : > { %914 = vrot.lane.b32.xlu2 %v889_v26, %s1472_s10 }
  0xba   : > { %v839_v8 = vpop.permute.xlu0 %838  ;;  %v778_v39 = vpop.permute.xlu1 %777 }
  0xbb   : > { %v881_v52 = vsel %vm871_vm8, %v860_v18, %v839_v8  ;;  %v870_v40 = vsel %vm850_vm7, %v1701_v23, %v778_v39  ;;  %v985_v23 = vunpack.c.l.b16 %v971_v58 }
  0xbc   : > { %910 = vrot.lane.b32.xlu1 %v1749_v21, %s1472_s10  ;;  %921 = vrot.lane.b32.xlu0 %v881_v52, %s1473_s11  ;;  %v891_v42 = vsel %vm871_vm8, %v870_v40, %v849_v41 }
  0xbd   : > { %902 = vrot.lane.b32.xlu2 %v1769_v29, %s1472_s10  ;;  %v988_v43 = vpack.c.b16 %v985_v23, %v985_v23 }
  0xbf   : > { %v1010_v44 = vsel %vm1008_vm9, %v988_v43, 0 }
  0xc0   : > { %1377 = vmatpush.bf16.msra.mxu2 %v1010_v44  ;;  %1378 = vmatpush.bf16.msra.mxu3 %v1010_v44 }
  0xc1   : > { %1017 = vmatpush.bf16.msra.mxu0 %v1010_v44  ;;  %1376 = vmatpush.bf16.msra.mxu1 %v1010_v44 }
  0xc2   : > { %v760_v47 = vpop.permute.xlu1 %759 }
  0xc3   : > { %v852_v61 = vsel %vm850_vm7, %v1730_v59, %v760_v47 }
  0xc4   : > { %927 = vrot.lane.b32.xlu0 %v1760_v10, %s1473_s11  ;;  %931 = vrot.lane.b32.xlu1 %v891_v42, %s1473_s11  ;;  %v873_v0 = vsel %vm871_vm8, %v852_v61, %v831_v46 }
  0xc5   : > { %923 = vrot.lane.b32.xlu2 %v1746_v20, %s1473_s11  ;;  %1380 = vmatpush.bf16.msra.mxu2 %v1375_v16 }
  0xc6   : > { %1381 = vmatpush.bf16.msra.mxu3 %v1375_v16  ;;  %1018 = vmatpush.bf16.msra.mxu0 %v1375_v16 }
  0xc7   : > { %1379 = vmatpush.bf16.msra.mxu1 %v1375_v16 }
  0xc9   : > { %1383 = vmatpush.bf16.msra.mxu2 %v1374_v45 }
  0xca   : > { %1384 = vmatpush.bf16.msra.mxu3 %v1374_v45  ;;  %1019 = vmatpush.bf16.msra.mxu0 %v1374_v45 }
  0xcb   : > { %1382 = vmatpush.bf16.msra.mxu1 %v1374_v45 }
  0xcc   : > { %906 = vrot.lane.b32.xlu0 %v881_v52, %s1472_s10  ;;  %919 = vrot.lane.b32.xlu1 %v1778_v36, %s1473_s11 }
  0xf7   : > { %v926_v49 = vpop.permute.xlu2 %925 }
 0x107   : > { %v918_v60 = vpop.permute.xlu2 %917 }
 0x10f   : > { %v909_v48 = vpop.permute.xlu0 %908  ;;  %v915_v3 = vpop.permute.xlu2 %914 }
 0x110   : > { %v943_v50 = vsel %vm933_vm10, %v881_v52, %v909_v48  ;;  %v949_v7 = vsel %vm933_vm10, %v1760_v10, %v915_v3 }
 0x111   : > { %v960_v51 = vsel %vm950_vm11, %v943_v50, %v926_v49 }
 0x112   : > { %1358 = vmatmul.msk.bf16.vlgmr.msra.gmra.mxu2 %vm991_vm12, %v960_v51 }
 0x117   : > { %v913_v53 = vpop.permute.xlu1 %912  ;;  %v930_v54 = vpop.permute.xlu0 %929 }
 0x118   : > { %v947_v55 = vsel %vm933_vm10, %v1749_v21, %v913_v53  ;;  %v903_v59 = vpop.permute.xlu2 %902 }
 0x119   : > { %v964_v56 = vsel %vm950_vm11, %v947_v55, %v930_v54  ;;  %v937_v17 = vsel %vm933_vm10, %v1781_v37, %v903_v59 }
 0x11a   : > { %1360 = vmatmul.msk.bf16.vlgmr.msra.gmra.mxu3 %vm991_vm12, %v964_v56 }
 0x120   : > { %v924_v22 = vpop.permute.xlu2 %923 }
 0x126   : > { %v905_v62 = vpop.permute.xlu1 %904  ;;  %v901_v63 = vpop.permute.xlu0 %900 }
 0x127   : > { %v935_v1 = vsel %vm933_vm10, %v873_v0, %v901_v63  ;;  %v939_v4 = vsel %vm933_vm10, %v1769_v29, %v905_v62 }
 0x128   : > { %v952_v2 = vsel %vm950_vm11, %v935_v1, %v918_v60 }
 0x129   : > { %1354 = vmatmul.msk.bf16.vlgmr.msra.gmra.mxu0 %vm991_vm12, %v952_v2 }
 0x12e   : > { %v911_v5 = vpop.permute.xlu1 %910  ;;  %v922_v6 = vpop.permute.xlu0 %921 }
 0x12f   : > { %v956_v9 = vsel %vm950_vm11, %v939_v4, %v922_v6  ;;  %v945_v11 = vsel %vm933_vm10, %v1746_v20, %v911_v5 }
 0x130   : > { %1356 = vmatmul.msk.bf16.vlgmr.msra.gmra.mxu1 %vm991_vm12, %v956_v9 }
 0x136   : > { %v928_v12 = vpop.permute.xlu0 %927  ;;  %v932_v13 = vpop.permute.xlu1 %931 }
 0x137   : > { %v962_v14 = vsel %vm950_vm11, %v945_v11, %v928_v12  ;;  %v966_v15 = vsel %vm950_vm11, %v949_v7, %v932_v13 }
 0x138   : > { %1359 = vmatmul.msk.bf16.gmra.mxu2 %vm991_vm12, %v962_v14  ;;  %1361 = vmatmul.msk.bf16.gmra.mxu3 %vm991_vm12, %v966_v15 }
 0x13e   : > { %v907_v19 = vpop.permute.xlu0 %906  ;;  %v920_v21 = vpop.permute.xlu1 %919 }
 0x13f   : > { %v941_v20 = vsel %vm933_vm10, %v1778_v36, %v907_v19  ;;  %v954_v24 = vsel %vm950_vm11, %v937_v17, %v920_v21 }
 0x140   : > { %1355 = vmatmul.msk.bf16.gmra.mxu0 %vm991_vm12, %v954_v24  ;;  %v958_v30 = vsel %vm950_vm11, %v941_v20, %v924_v22 }
 0x141   : > { %1357 = vmatmul.msk.bf16.gmra.mxu1 %vm991_vm12, %v958_v30 }
 0x195   : > { %v1041_v25 = vpop.f32.mrf.mxu2 }
 0x196   : > { %v1042_v10 = vadd.f32 %v1429_v38, %v1041_v25 }
 0x198   : > { %v1069_v26 = vmax.f32 %v1042_v10, 0.0 }
 0x19a   : > { %1085 = vst [vmem:[%s1856_s28 + $0x40] sm:$0xff] %v1069_v26 }
 0x19d   : > { %v1043_v27 = vpop.f32.mrf.mxu2  ;;  %v1051_v28 = vpop.f32.mrf.mxu3 }
 0x19e   : > { %v1044_v31 = vadd.f32 %v1429_v38, %v1043_v27  ;;  %v1052_v32 = vadd.f32 %v1429_v38, %v1051_v28 }
 0x1a0   : > { %v1070_v29 = vmax.f32 %v1044_v31, 0.0  ;;  %v1073_v57 = vmax.f32 %v1052_v32, 0.0 }
 0x1a2   : > { %1086 = vst [vmem:[%s1856_s28 + $0x48] sm:$0xff] %v1070_v29 }
 0x1a3   : > { %1089 = vst [vmem:[%s1856_s28 + $0x60] sm:$0xff] %v1073_v57 }
 0x1a5   : > { %v1053_v33 = vpop.f32.mrf.mxu3 }
 0x1a6   : > { %v1054_v34 = vadd.f32 %v1429_v38, %v1053_v33  ;;  %v1021_v35 = vpop.f32.mrf.mxu0 }
 0x1a7   : > { %v1022_v36 = vadd.f32 %v1429_v38, %v1021_v35 }
 0x1a8   : > { %v1074_v37 = vmax.f32 %v1054_v34, 0.0 }
 0x1a9   : > { %v1061_v18 = vmax.f32 %v1022_v36, 0.0 }
 0x1aa   : > { %1090 = vst [vmem:[%s1856_s28 + $0x68] sm:$0xff] %v1074_v37 }
 0x1ab   : > { %1077 = vst [vmem:[%s1856_s28] sm:$0xff] %v1061_v18 }
 0x1ad   : > { %v1031_v8 = vpop.f32.mrf.mxu1 }
 0x1ae   : > { %v1032_v52 = vadd.f32 %v1429_v38, %v1031_v8  ;;  %v1023_v39 = vpop.f32.mrf.mxu0 }
 0x1af   : > { %v1024_v40 = vadd.f32 %v1429_v38, %v1023_v39 }
 0x1b0   : > { %v1065_v41 = vmax.f32 %v1032_v52, 0.0 }
 0x1b1   : > { %v1062_v42 = vmax.f32 %v1024_v40, 0.0 }
 0x1b2   : > { %1081 = vst [vmem:[%s1856_s28 + $0x20] sm:$0xff] %v1065_v41 }
 0x1b3   : > { %1078 = vst [vmem:[%s1856_s28 + $0x8] sm:$0xff] %v1062_v42 }
 0x1b5   : > { %v1033_v58 = vpop.f32.mrf.mxu1 }
 0x1b6   : > { %v1034_v23 = vadd.f32 %v1429_v38, %v1033_v58 }
 0x1b8   : > { %v1066_v43 = vmax.f32 %v1034_v23, 0.0 }
 0x1ba   : > { %1082 = vst [vmem:[%s1856_s28 + $0x28] sm:$0xff] %v1066_v43 }
 0x1bb   : > { %v1046_v44 = vpop.f32.mrf.mxu2  ;;  %v1056_v16 = vpop.f32.mrf.mxu3 }
 0x1bc   : > { %v1047_v45 = vadd.f32 %v1429_v38, %v1046_v44  ;;  %v1057_v46 = vadd.f32 %v1429_v38, %v1056_v16 }
 0x1bd   : > { %v1026_v47 = vpop.f32.mrf.mxu0 }
 0x1be   : > { %v1071_v48 = vmax.f32 %v1047_v45, 0.0  ;;  %v1075_v49 = vmax.f32 %v1057_v46, 0.0  ;;  %v1027_v50 = vadd.f32 %v1429_v38, %v1026_v47  ;;  %v1036_v51 = vpop.f32.mrf.mxu1 }
 0x1bf   : > { %v1037_v53 = vadd.f32 %v1429_v38, %v1036_v51 }
 0x1c0   : > { %1087 = vst [vmem:[%s1856_s28 + $0x50] sm:$0xff] %v1071_v48  ;;  %v1063_v54 = vmax.f32 %v1027_v50, 0.0 }
 0x1c1   : > { %1091 = vst [vmem:[%s1856_s28 + $0x70] sm:$0xff] %v1075_v49  ;;  %v1067_v55 = vmax.f32 %v1037_v53, 0.0 }
 0x1c2   : > { %1079 = vst [vmem:[%s1856_s28 + $0x10] sm:$0xff] %v1063_v54 }
 0x1c3   : > { %1083 = vst [vmem:[%s1856_s28 + $0x30] sm:$0xff] %v1067_v55  ;;  %v1048_v56 = vpop.f32.mrf.mxu2  ;;  %v1058_v60 = vpop.f32.mrf.mxu3 }
 0x1c4   : > { %v1049_v61 = vadd.f32 %v1429_v38, %v1048_v56  ;;  %v1059_v62 = vadd.f32 %v1429_v38, %v1058_v60 }
 0x1c5   : > { %v1028_v63 = vpop.f32.mrf.mxu0 }
 0x1c6   : > { %v1072_v0 = vmax.f32 %v1049_v61, 0.0  ;;  %v1076_v1 = vmax.f32 %v1059_v62, 0.0  ;;  %v1029_v2 = vadd.f32 %v1429_v38, %v1028_v63  ;;  %v1038_v3 = vpop.f32.mrf.mxu1 }
 0x1c7   : > { %v1039_v4 = vadd.f32 %v1429_v38, %v1038_v3 }
 0x1c8   : > { %1088 = vst [vmem:[%s1856_s28 + $0x58] sm:$0xff] %v1072_v0  ;;  %v1064_v5 = vmax.f32 %v1029_v2, 0.0 }
 0x1c9   : > { %1092 = vst [vmem:[%s1856_s28 + $0x78] sm:$0xff] %v1076_v1  ;;  %v1068_v6 = vmax.f32 %v1039_v4, 0.0 }
 0x1ca   : > { %1080 = vst [vmem:[%s1856_s28 + $0x18] sm:$0xff] %v1064_v5 }
 0x1cb   : > { %1084 = vst [vmem:[%s1856_s28 + $0x38] sm:$0xff] %v1068_v6 }
 0x1cc PF: > { %s15_s22 = sadd.s32 1, %s1468_s22   ;;  %s1897_s18 = smov %s1460_s20 }
 0x1cd   : > { %p12_p12 = scmp.ge.s32.totalorder %s15_s22, 6   ;;  %s1898_s19 = smov %s1464_s21 }
 0x1ce   : > { %s1899_s20 = smov %s1902_s23  ;;  %s1900_s21 = smov %s1906_s24 }
 0x1cf   :  { %14 = sbr.rel (!%p12_p12) target bundleno = 3 (0x3), region = 82 }

</bundles_post_ra>
